<compile_context>
chip_gen: v5e
topology: v5e:2x2
jax: 0.10.0
libtpu: 0.0.40
codegen_flags: <defaults>
</compile_context>

<pallas_src>
import functools

import jax
import jax.numpy as jnp
from jax.experimental import pallas as pl
from jax.experimental.pallas import tpu as pltpu


def _norm_kernel(x_ref, g_ref, b_ref, o_ref, *, eps, n):
    # x_ref: (NB, CHW) lane-dense slab, one sample per sublane row.
    x = x_ref[...].astype(jnp.float32)

    # Fused single-traversal statistics: sum and sum-of-squares per sample.
    s = jnp.sum(x, axis=1, keepdims=True)        # (NB, 1)
    ss = jnp.sum(x * x, axis=1, keepdims=True)   # (NB, 1)
    mean = s / n
    # torch.std default = unbiased (Bessel, n-1).  (n==1 -> nan, like torch.)
    var = (ss - n * mean * mean) / (n - 1)
    std = jnp.sqrt(var)

    # eps is added to std (NOT to var) to match the module.
    # Per-sample scalars only; exact reciprocal here keeps the 1e-5 tolerance
    # vs the reference while still removing every per-element divide.
    inv = 1.0 / (std + eps)                      # (NB, 1)

    g = g_ref[...].astype(jnp.float32)           # (1, CHW) per-element gamma slab
    b = b_ref[...].astype(jnp.float32)           # (1, CHW) per-element beta slab

    y = (x - mean) * inv                         # sub + mul (no divide)
    o_ref[...] = (y * g + b).astype(o_ref.dtype)


def layer_norm(x, gamma, beta, eps=1e-5):
    """x: (N, C, H, W); gamma, beta: (C,). Per-sample norm + per-channel affine."""
    N, C, H, W = x.shape
    hw = H * W
    chw = C * hw

    # Lane-dense flattening: last dim = CHW (full-dim block, so any size is legal;
    # for the test shape CHW = 1024 = 8*128, fully unmasked stores).
    x2 = x.reshape(N, chw)
    # Per-element affine slabs so the kernel needs no channel bookkeeping.
    g_slab = jnp.repeat(gamma.astype(x.dtype), hw).reshape(1, chw)
    b_slab = jnp.repeat(beta.astype(x.dtype), hw).reshape(1, chw)

    # Pick samples-per-block so each input buffer is a few MiB
    # (double-buffered in+out ~= 16 MiB, safe on v5e/v6e/v7x VMEM).
    itemsize = x.dtype.itemsize
    sample_bytes = chw * itemsize
    target_block_bytes = 4 * 1024 * 1024
    nb = max(1, target_block_bytes // sample_bytes)
    if nb >= N:
        nb = N                       # full batch dim -> always a legal block
    else:
        nb = (nb // 8) * 8           # keep sublane dim a multiple of 8
        if nb == 0:
            nb = min(8, N)
    grid_n = pl.cdiv(N, nb)

    kernel = functools.partial(_norm_kernel, eps=eps, n=chw)

    cost = pl.CostEstimate(
        flops=8 * N * chw,
        transcendentals=2 * N,  # sqrt + reciprocal per sample
        bytes_accessed=(2 * N * chw + 2 * chw) * itemsize,
    )

    out = pl.pallas_call(
        kernel,
        out_shape=jax.ShapeDtypeStruct((N, chw), x.dtype),
        grid_spec=pltpu.PrefetchScalarGridSpec(
            num_scalar_prefetch=0,
            grid=(grid_n,),
            in_specs=[
                pl.BlockSpec((nb, chw), lambda i: (i, 0)),
                # Constant index map -> fetched once, resident across the grid.
                pl.BlockSpec((1, chw), lambda i: (0, 0)),
                pl.BlockSpec((1, chw), lambda i: (0, 0)),
            ],
            out_specs=pl.BlockSpec((nb, chw), lambda i: (i, 0)),
        ),
        compiler_params=pltpu.CompilerParams(
            dimension_semantics=("parallel",),
            vmem_limit_bytes=64 * 1024 * 1024,
        ),
        cost_estimate=cost,
    )(x2, g_slab, b_slab)
    return out.reshape(N, C, H, W)


def _reference(x, gamma, beta, eps=1e-5):
    # Pure-JAX replica of the PyTorch forward (two-pass, torch.std unbiased).
    B = x.shape[0]
    flat = x.reshape(B, -1).astype(jnp.float32)
    mean = flat.mean(axis=1).reshape(B, 1, 1, 1)
    std = jnp.sqrt(
        jnp.sum((flat - flat.mean(axis=1, keepdims=True)) ** 2, axis=1)
        / (flat.shape[1] - 1)
    ).reshape(B, 1, 1, 1)
    y = (x.astype(jnp.float32) - mean) / (std + eps)
    y = gamma.reshape(1, -1, 1, 1) * y + beta.reshape(1, -1, 1, 1)
    return y.astype(x.dtype)


if __name__ == "__main__":
    key = jax.random.PRNGKey(0)
    kx, kg = jax.random.split(key)

    N, C, H, W = 2, 4, 16, 16
    x = jax.random.normal(kx, (N, C, H, W), dtype=jnp.float32)
    # torch.Tensor(n).uniform_() -> U[0, 1); zeros for beta
    gamma = jax.random.uniform(kg, (C,), dtype=jnp.float32)
    beta = jnp.zeros((C,), dtype=jnp.float32)

    out = layer_norm(x, gamma, beta, eps=1e-5)
    out = jax.block_until_ready(out)

    ref = _reference(x, gamma, beta, eps=1e-5)
    assert out.shape == (N, C, H, W)
    assert jnp.allclose(out, ref, atol=1e-5, rtol=1e-5)

    print("KERNEL_OK")
</pallas_src>

<mosaic_0001>
module attributes {stable_mosaic.version = 11 : i64} {
  func.func @_norm_kernel(%arg0: i32, %arg1: memref<2x1024xf32, #tpu.memory_space<vmem>>, %arg2: memref<1x1024xf32, #tpu.memory_space<vmem>>, %arg3: memref<1x1024xf32, #tpu.memory_space<vmem>>, %arg4: memref<2x1024xf32, #tpu.memory_space<vmem>>) attributes {dimension_semantics = [#tpu.dimension_semantics<parallel>], iteration_bounds = array<i64: 1>, scalar_prefetch = 0 : i64, scratch_operands = 0 : i64, tpu.core_type = #tpu.core_type<tc>, window_params = [{transform_indices = @transform_0, window_bounds = array<i64: 2, 1024>}, {pipeline_mode = #tpu.pipeline_mode<synchronous>, transform_indices = @transform_1, window_bounds = array<i64: 1, 1024>}, {pipeline_mode = #tpu.pipeline_mode<synchronous>, transform_indices = @transform_2, window_bounds = array<i64: 1, 1024>}, {transform_indices = @transform_3, window_bounds = array<i64: 2, 1024>}]} {
    %c0 = arith.constant 0 : index
    %c0_0 = arith.constant 0 : index
    %0 = vector.load %arg1[%c0, %c0_0] : memref<2x1024xf32, #tpu.memory_space<vmem>>, vector<2x1024xf32>
    %cst = arith.constant dense<0.000000e+00> : vector<2xf32>
    %1 = vector.multi_reduction <add>, %0, %cst [1] : vector<2x1024xf32> to vector<2xf32>
    %2 = vector.shape_cast %1 : vector<2xf32> to vector<2x1xf32>
    %3 = arith.mulf %0, %0 : vector<2x1024xf32>
    %cst_1 = arith.constant dense<0.000000e+00> : vector<2xf32>
    %4 = vector.multi_reduction <add>, %3, %cst_1 [1] : vector<2x1024xf32> to vector<2xf32>
    %5 = vector.shape_cast %4 : vector<2xf32> to vector<2x1xf32>
    %cst_2 = arith.constant 1.024000e+03 : f32
    %6 = vector.broadcast %cst_2 : f32 to vector<2x1xf32>
    %7 = arith.divf %2, %6 : vector<2x1xf32>
    %cst_3 = arith.constant 1.024000e+03 : f32
    %8 = vector.broadcast %cst_3 : f32 to vector<2x1xf32>
    %9 = arith.mulf %8, %7 : vector<2x1xf32>
    %10 = arith.mulf %9, %7 : vector<2x1xf32>
    %11 = arith.subf %5, %10 : vector<2x1xf32>
    %cst_4 = arith.constant 1.023000e+03 : f32
    %12 = vector.broadcast %cst_4 : f32 to vector<2x1xf32>
    %13 = arith.divf %11, %12 : vector<2x1xf32>
    %14 = math.sqrt %13 : vector<2x1xf32>
    %cst_5 = arith.constant 9.99999974E-6 : f32
    %15 = vector.broadcast %cst_5 : f32 to vector<2x1xf32>
    %16 = arith.addf %14, %15 : vector<2x1xf32>
    %cst_6 = arith.constant 1.000000e+00 : f32
    %17 = vector.broadcast %cst_6 : f32 to vector<2x1xf32>
    %18 = arith.divf %17, %16 : vector<2x1xf32>
    %c0_7 = arith.constant 0 : index
    %c0_8 = arith.constant 0 : index
    %19 = vector.load %arg2[%c0_7, %c0_8] : memref<1x1024xf32, #tpu.memory_space<vmem>>, vector<1x1024xf32>
    %c0_9 = arith.constant 0 : index
    %c0_10 = arith.constant 0 : index
    %20 = vector.load %arg3[%c0_9, %c0_10] : memref<1x1024xf32, #tpu.memory_space<vmem>>, vector<1x1024xf32>
    %21 = vector.broadcast %7 : vector<2x1xf32> to vector<2x1024xf32>
    %22 = arith.subf %0, %21 : vector<2x1024xf32>
    %23 = vector.broadcast %18 : vector<2x1xf32> to vector<2x1024xf32>
    %24 = arith.mulf %22, %23 : vector<2x1024xf32>
    %25 = vector.broadcast %19 : vector<1x1024xf32> to vector<2x1024xf32>
    %26 = arith.mulf %24, %25 : vector<2x1024xf32>
    %27 = vector.broadcast %20 : vector<1x1024xf32> to vector<2x1024xf32>
    %28 = arith.addf %26, %27 : vector<2x1024xf32>
    %c0_11 = arith.constant 0 : index
    %c0_12 = arith.constant 0 : index
    %29 = vector.load %arg4[%c0_11, %c0_12] : memref<2x1024xf32, #tpu.memory_space<vmem>>, vector<2x1024xf32>
    tpu.vector_store %arg4[%c0_11, %c0_12], %28 {strides = array<i32>} : memref<2x1024xf32, #tpu.memory_space<vmem>>, vector<2x1024xf32>,
    return
  }
  func.func @transform_0(%arg0: i32) -> (i32, i32) {
    %c0_i32 = arith.constant 0 : i32
    %c0_i32_0 = arith.constant 0 : i32
    return %arg0, %c0_i32 : i32, i32
  }
  func.func @transform_1(%arg0: i32) -> (i32, i32) {
    %c0_i32 = arith.constant 0 : i32
    %c0_i32_0 = arith.constant 0 : i32
    %c0_i32_1 = arith.constant 0 : i32
    return %c0_i32, %c0_i32_0 : i32, i32
  }
  func.func @transform_2(%arg0: i32) -> (i32, i32) {
    %c0_i32 = arith.constant 0 : i32
    %c0_i32_0 = arith.constant 0 : i32
    %c0_i32_1 = arith.constant 0 : i32
    return %c0_i32, %c0_i32_0 : i32, i32
  }
  func.func @transform_3(%arg0: i32) -> (i32, i32) {
    %c0_i32 = arith.constant 0 : i32
    %c0_i32_0 = arith.constant 0 : i32
    return %arg0, %c0_i32 : i32, i32
  }
}

</mosaic_0001>

<bundles_post_ra>
// kernel: tpu_custom_call.1
= control target key start
LH: loop header
LB: loop body
LE: loop exit
PB: predicated region body
PF: predicated region fallthrough
CT: control target
= control target key end

     0   :  { %8 = vsyncpa [#allocation3], 0  ;;  %s470_s0 = inlined_call_operand.hbm [shape: f32[2,1024], index: 0, kind: input, shape index: {}]   ;;  %s471_s1 = inlined_call_operand.hbm [shape: f32[1,1024], index: 1, kind: input, shape index: {}]   ;;  %s472_s2 = inlined_call_operand.hbm [shape: f32[1,1024], index: 2, kind: input, shape index: {}]   ;;  %s473_s3 = inlined_call_operand.hbm [shape: f32[2,1024], index: 3, kind: output, shape index: {}]  }
   0x1   :  { %9 = vsyncpa [#allocation6], 0  ;;  %s27_s14 = sshll.u32 %s471_s1, 4  ;;  %s28_s14 = int_to_ptr.hbm [resolvable:$true] %s27_s14 }
   0x2   :  { %10 = vsyncpa [#allocation4], 0  ;;  %s391_s15 = smov [#allocation5]   ;;  %s16_s19 = sshll.u32 %s470_s0, 4  ;;  %s17_s19 = int_to_ptr.hbm [resolvable:$true] %s16_s19 }
   0x3   :  { %s29_s16 = sshll.u32 %s391_s15, 4  ;;  %s392_s20 = smov [#allocation2]   ;;  %s30_s16 = int_to_ptr.vmem [resolvable:$true] %s29_s16 }
   0x4   :  { %32 = dma.hbm_to_vmem [thread:$0]  %s28_s14, 128, %s30_s16, [#allocation6]  }
   0x5   :  { %s18_s21 = sshll.u32 %s392_s20, 4  ;;  %s38_s24 = sshll.u32 %s472_s2, 4  ;;  %s19_s21 = int_to_ptr.vmem [resolvable:$true] %s18_s21  ;;  %s39_s24 = int_to_ptr.hbm [resolvable:$true] %s38_s24 }
   0x6   :  { %21 = dma.hbm_to_vmem [thread:$0]  %s17_s19, 256, %s19_s21, [#allocation3]  }
   0x7   :  { %s393_s1 = smov [#allocation7]  }
   0x8   :  { %s40_s25 = sshll.u32 %s393_s1, 4  ;;  %s41_s25 = int_to_ptr.vmem [resolvable:$true] %s40_s25 }
   0x9   :  { %43 = dma.hbm_to_vmem [thread:$0]  %s39_s24, 128, %s41_s25, [#allocation6]  }
   0xa   :  { %385 = dma.done.wait [#allocation3], 256  }
   0xb   :  { %386 = vsyncadd [#allocation3], 4294967040 }
   0xc   :  { %387 = dma.done.wait [#allocation6], 256  }
   0xd   :  { %388 = vsyncadd [#allocation6], 4294967040  ;;  %v427_v0 = vld [vmem:[#allocation2] sm:$0xff]  ;;  %v429_v1 = vld [vmem:[#allocation2 + $0x8] sm:$0xff]  ;;  %vm79_vm0 = vcmask 1041408   ;;  %v394_v50 = vmov 1024.0  }
   0xe   :  { %60 = vst [vmem:[#allocation1] ss:$4 sm:$0xff] %v427_v0  ;;  %v97_v4 = vmul.f32 %v427_v0, %v427_v0  ;;  %v98_v7 = vmul.f32 %v429_v1, %v429_v1  ;;  %281 = vrcp.f32 %v394_v50  ;;  %v395_v53 = vmov 1023.0   ;;  %s397_s0 = smov [#allocation8]   ;;  %s263_s28 = sshll.u32 %s473_s3, 4  ;;  %s264_s28 = int_to_ptr.hbm [resolvable:$true] %s263_s28 }
   0xf   :  { %62 = vst [vmem:[#allocation1 + $0x20] ss:$4 sm:$0xff] %v429_v1  ;;  %283 = vrcp.f32 %v395_v53  ;;  %vm218_vm5 = vcmask 1045508   ;;  %vm220_vm9 = vcmask 1043456   ;;  %s261_s2 = sshll.u32 %s397_s0, 4  ;;  %s262_s2 = int_to_ptr.vmem [resolvable:$true] %s261_s2 }
  0x14   :  { %v282_v51 = vpop.eup %281 }
  0x15   :  { %v63_v2 = vld.sshfl [vmem:[#allocation1] sm:$0xff pattern:$0x73625140]  ;;  %v64_v3 = vld.sshfl [vmem:[#allocation1 + $0x8] sm:$0xff pattern:$0x73625140]  ;;  %v284_v56 = vpop.eup %283  ;;  %vm142_vm1 = vweird.f32 %v282_v51 }
  0x16   :  { %v65_v5 = vld.sshfl [vmem:[#allocation1 + $0x10] sm:$0xff pattern:$0x73625140]  ;;  %v66_v6 = vld.sshfl [vmem:[#allocation1 + $0x18] sm:$0xff pattern:$0x73625140]  ;;  %vm153_vm2 = vweird.f32 %v284_v56 }
  0x17   :  { %v67_v8 = vld.sshfl [vmem:[#allocation1 + $0x20] sm:$0xff pattern:$0x73625140]  ;;  %v68_v9 = vld.sshfl [vmem:[#allocation1 + $0x28] sm:$0xff pattern:$0x73625140] }
  0x18   :  { %v69_v10 = vld.sshfl [vmem:[#allocation1 + $0x30] sm:$0xff pattern:$0x73625140]  ;;  %v70_v11 = vld.sshfl [vmem:[#allocation1 + $0x38] sm:$0xff pattern:$0x73625140] }
  0x19   :  { %v80_v12 = vsel %vm79_vm0, %v63_v2, 0.0  ;;  %v81_v13 = vsel %vm79_vm0, %v64_v3, 0.0  ;;  %v83_v14 = vsel %vm79_vm0, %v65_v5, 0.0  ;;  %101 = vst [vmem:[#allocation1] ss:$4 sm:$0xff] %v97_v4  ;;  %v85_v16 = vsel %vm79_vm0, %v66_v6, 0.0 }
  0x1a   :  { %v82_v15 = vadd.f32 %v81_v13, %v80_v12  ;;  %103 = vst [vmem:[#allocation1 + $0x20] ss:$4 sm:$0xff] %v98_v7  ;;  %v87_v18 = vsel %vm79_vm0, %v67_v8, 0.0  ;;  %v89_v20 = vsel %vm79_vm0, %v68_v9, 0.0  ;;  %v91_v22 = vsel %vm79_vm0, %v69_v10, 0.0 }
  0x1b   :  { %v93_v27 = vsel %vm79_vm0, %v70_v11, 0.0  ;;  %v138_v52 = vmul.f32 1024.0, %v282_v51  ;;  %v149_v58 = vmul.f32 1023.0, %v284_v56 }
  0x1c   :  { %v84_v17 = vadd.f32 %v83_v14, %v82_v15 }
  0x1d   :  { %v139_v54 = vsub.f32 1.0, %v138_v52  ;;  %v150_v60 = vsub.f32 1.0, %v149_v58 }
  0x1e   :  { %v86_v19 = vadd.f32 %v85_v16, %v84_v17 }
  0x1f   :  { %v140_v55 = vmul.f32 %v282_v51, %v139_v54  ;;  %v151_v63 = vmul.f32 %v284_v56, %v150_v60 }
  0x20   :  { %v88_v21 = vadd.f32 %v87_v18, %v86_v19  ;;  %v104_v23 = vld.sshfl [vmem:[#allocation1] sm:$0xff pattern:$0x73625140]  ;;  %v105_v24 = vld.sshfl [vmem:[#allocation1 + $0x8] sm:$0xff pattern:$0x73625140] }
  0x21   :  { %v106_v25 = vld.sshfl [vmem:[#allocation1 + $0x10] sm:$0xff pattern:$0x73625140]  ;;  %v107_v28 = vld.sshfl [vmem:[#allocation1 + $0x18] sm:$0xff pattern:$0x73625140]  ;;  %v141_v57 = vadd.f32 %v282_v51, %v140_v55  ;;  %v152_v3 = vadd.f32 %v284_v56, %v151_v63 }
  0x22   :  { %v90_v26 = vadd.f32 %v89_v20, %v88_v21  ;;  %v120_v30 = vsel %vm79_vm0, %v104_v23, 0.0  ;;  %v121_v31 = vsel %vm79_vm0, %v105_v24, 0.0  ;;  %v123_v32 = vsel %vm79_vm0, %v106_v25, 0.0  ;;  %v108_v33 = vld.sshfl [vmem:[#allocation1 + $0x20] sm:$0xff pattern:$0x73625140] }
  0x23   :  { %v122_v34 = vadd.f32 %v121_v31, %v120_v30  ;;  %v125_v36 = vsel %vm79_vm0, %v107_v28, 0.0  ;;  %v109_v37 = vld.sshfl [vmem:[#allocation1 + $0x28] sm:$0xff pattern:$0x73625140]  ;;  %v127_v39 = vsel %vm79_vm0, %v108_v33, 0.0  ;;  %v143_v59 = vsel %vm142_vm1, %v282_v51, %v141_v57 }
  0x24   :  { %v92_v29 = vadd.f32 %v91_v22, %v90_v26  ;;  %v110_v40 = vld.sshfl [vmem:[#allocation1 + $0x30] sm:$0xff pattern:$0x73625140]  ;;  %v129_v42 = vsel %vm79_vm0, %v109_v37, 0.0  ;;  %v154_v5 = vsel %vm153_vm2, %v284_v56, %v152_v3  ;;  %v396_v18 = vmov 269488144  }
  0x25   :  { %v124_v38 = vadd.f32 %v123_v32, %v122_v34  ;;  %v111_v43 = vld.sshfl [vmem:[#allocation1 + $0x38] sm:$0xff pattern:$0x73625140]  ;;  %v131_v45 = vsel %vm79_vm0, %v110_v40, 0.0  ;;  %v188_v19 = vunpack.c.l.s4 %v396_v18 }
  0x26   :  { %v94_v35 = vadd.f32 %v93_v27, %v92_v29  ;;  %v133_v47 = vsel %vm79_vm0, %v111_v43, 0.0  ;;  %v184_v22 = vld [vmem:[#allocation5] sm:$0xff]  ;;  %v185_v29 = vld [vmem:[#allocation7] sm:$0xff] }
  0x27   :  { %v126_v41 = vadd.f32 %v125_v36, %v124_v38  ;;  %v189_v23 = vunpack.c.0.s8 %v188_v19  ;;  %v204_v24 = vperm.slane %v184_v22, 1  ;;  %v205_v25 = vperm.slane %v184_v22, 2 }
  0x28   :  { %95 = vadd.xlane.f32.xlu0 %v94_v35  ;;  %v206_v26 = vperm.slane %v184_v22, 3  ;;  %v208_v27 = vperm.slane %v184_v22, 5  ;;  %v209_v30 = vperm.slane %v184_v22, 6  ;;  %v203_v32 = vperm.slane %v184_v22, 0 }
  0x29   :  { %v128_v44 = vadd.f32 %v127_v39, %v126_v41  ;;  %v207_v33 = vperm.slane %v184_v22, 4  ;;  %v210_v34 = vperm.slane %v184_v22, 7  ;;  %v211_v35 = vrot.slane %v204_v24, 6 }
  0x2a   :  { %v212_v37 = vrot.slane %v205_v25, 4  ;;  %v213_v38 = vrot.slane %v206_v26, 2  ;;  %v214_v39 = vrot.slane %v208_v27, 6  ;;  %v231_v40 = vperm.slane %v185_v29, 1 }
  0x2b   :  { %v130_v46 = vadd.f32 %v129_v42, %v128_v44  ;;  %v232_v41 = vperm.slane %v185_v29, 2  ;;  %v233_v42 = vperm.slane %v185_v29, 3  ;;  %v235_v43 = vperm.slane %v185_v29, 5 }
  0x2c   :  { %v230_v50 = vperm.slane %v185_v29, 0  ;;  %v234_v53 = vperm.slane %v185_v29, 4  ;;  %v238_v54 = vrot.slane %v231_v40, 6  ;;  %v219_v63 = vsel %vm218_vm5, %v212_v37, %v213_v38 }
  0x2d   :  { %v132_v48 = vadd.f32 %v131_v45, %v130_v46  ;;  %v215_v45 = vrot.slane %v209_v30, 4  ;;  %v236_v46 = vperm.slane %v185_v29, 6  ;;  %v239_v55 = vrot.slane %v232_v41, 4 }
  0x2e   :  { %v240_v56 = vrot.slane %v233_v42, 2  ;;  %v241_v57 = vrot.slane %v235_v43, 6  ;;  %v222_v3 = vsel %vm79_vm0, %v207_v33, %v214_v39 }
  0x2f   :  { %v134_v49 = vadd.f32 %v133_v47, %v132_v48  ;;  %v237_v47 = vperm.slane %v185_v29, 7 }
  0x31   :  { %135 = vadd.xlane.f32.xlu0 %v134_v49  ;;  %v216_v49 = vrot.slane %v210_v34, 2  ;;  %v243_v60 = vrot.slane %v237_v47, 2 }
  0x9b   :  { %v96_v61 = vpop.xlane.xlu0 %95 }
  0x9c   :  { %v144_v62 = vmul.f32 %v143_v59, %v96_v61  ;;  %v242_v59 = vrot.slane %v236_v46, 4 }
  0x9e   :  { %v145_v2 = vmul.f32 1024.0, %v144_v62  ;;  %v190_v28 = vperm.slane %v144_v62, %v189_v23 }
  0xa0   :  { %v146_v4 = vmul.f32 %v145_v2, %v144_v62  ;;  %v217_v62 = vsel %vm79_vm0, %v203_v32, %v211_v35 }
  0xa4   :  { %v136_v6 = vpop.xlane.xlu0 %135 }
  0xa5   :  { %v147_v7 = vsub.f32 %v136_v6, %v146_v4  ;;  %v223_v4 = vsel %vm218_vm5, %v215_v45, %v216_v49  ;;  %v193_v6 = vsub.f32 %v429_v1, %v190_v28 }
  0xa7   :  { %v155_v8 = vmul.f32 %v154_v5, %v147_v7  ;;  %v192_v5 = vsub.f32 %v427_v0, %v190_v28 }
  0xa9   :  { %285 = vrsqrt.f32 %v155_v8  ;;  %vm163_vm3 = vcmp.eq.f32.partialorder %v155_v8, inf  ;;  %v166_v16 = vand.u32 2147483648, %v155_v8  ;;  %vm165_vm4 = vcmp.eq.f32.partialorder %v155_v8, 0.0 }
  0xaf   :  { %v286_v9 = vpop.eup %285 }
  0xb0   :  { %v157_v10 = vmul.f32 %v286_v9, %v155_v8 }
  0xb2   :  { %v158_v11 = vmul.f32 %v286_v9, %v157_v10  ;;  %v245_v10 = vsel %vm218_vm5, %v239_v55, %v240_v56 }
  0xb4   :  { %v159_v12 = vmul.f32 0.5, %v158_v11  ;;  %v247_v11 = vsel %vm79_vm0, %v234_v53, %v241_v57 }
  0xb6   :  { %v160_v13 = vsub.f32 1.5, %v159_v12  ;;  %v248_v12 = vsel %vm218_vm5, %v242_v59, %v243_v60 }
  0xb7   :  { %v249_v1 = vsel %vm220_vm9, %v247_v11, %v248_v12 }
  0xb8   :  { %v161_v14 = vmul.f32 %v286_v9, %v160_v13  ;;  %v221_v13 = vsel %vm220_vm9, %v217_v62, %v219_v63 }
  0xba   :  { %v162_v15 = vmul.f32 %v161_v14, %v155_v8  ;;  %v224_v14 = vsel %vm220_vm9, %v222_v3, %v223_v4 }
  0xbc   :  { %v164_v17 = vsel %vm163_vm3, %v155_v8, %v162_v15  ;;  %v244_v8 = vsel %vm79_vm0, %v230_v50, %v238_v54 }
  0xbd   :  { %v167_v20 = vsel %vm165_vm4, %v166_v16, %v164_v17  ;;  %v246_v0 = vsel %vm220_vm9, %v244_v8, %v245_v10 }
  0xbe   :  { %v168_v21 = vadd.f32 1e-05, %v167_v20 }
  0xc0   :  { %287 = vrcp.f32 %v168_v21  ;;  %v180_v48 = vand.u32 2147483648, %v168_v21  ;;  %v178_v52 = vand.u32 2147483647, %v168_v21  ;;  %vm174_vm7 = vweird.f32 %v168_v21 }
  0xc2   :  { %v181_v61 = vor.u32 1.1754944e-38, %v180_v48  ;;  %vm179_vm10 = vcmp.eq.f32.partialorder %v178_v52, 8.507059e+37 }
  0xc6   :  { %v288_v31 = vpop.eup %287 }
  0xc7   :  { %v170_v36 = vmul.f32 %v288_v31, %v168_v21  ;;  %vm175_vm6 = vweird.f32 %v288_v31 }
  0xc8   :  { %vm176_vm8 = vmor %vm174_vm7, %vm175_vm6 }
  0xc9   :  { %v171_v44 = vsub.f32 1.0, %v170_v36 }
  0xcb   :  { %v172_v51 = vmul.f32 %v288_v31, %v171_v44 }
  0xcd   :  { %v173_v58 = vadd.f32 %v288_v31, %v172_v51 }
  0xcf   :  { %v177_v2 = vsel %vm176_vm8, %v288_v31, %v173_v58 }
  0xd0   :  { %v182_v7 = vsel %vm179_vm10, %v181_v61, %v177_v2 }
  0xd1   :  { %v198_v9 = vperm.slane %v182_v7, %v189_v23 }
  0xd3   :  { %v200_v15 = vmul.f32 %v198_v9, %v192_v5  ;;  %v201_v16 = vmul.f32 %v198_v9, %v193_v6 }
  0xd5   :  { %v227_v17 = vmul.f32 %v221_v13, %v200_v15  ;;  %v228_v18 = vmul.f32 %v224_v14, %v201_v16 }
  0xd7   :  { %v252_v19 = vadd.f32 %v246_v0, %v227_v17  ;;  %v253_v20 = vadd.f32 %v249_v1, %v228_v18 }
  0xd9   :  { %254 = vst [vmem:[#allocation8] sm:$0xff] %v252_v19 }
  0xda   :  { %255 = vst [vmem:[#allocation8 + $0x8] sm:$0xff] %v253_v20 }
  0xdb   :  { %266 = dma.vmem_to_hbm [thread:$0]  %s262_s2, 256, %s264_s28, [#allocation4]  }
  0xdc   :  { %389 = dma.done.wait [#allocation4], 256  }
  0xdd   :  { %390 = vsyncadd [#allocation4], 4294967040 }
  0xde   :  { %271 = vsyncpa [#allocation3], 1 }
  0xdf   :  { %272 = vsyncpa [#allocation6], 1 }
  0xe0   :  { %273 = vsyncpa [#allocation4], 1 }

</bundles_post_ra>
